<compile_context>
chip_gen: v5e
topology: v5e:2x2
jax: 0.10.0
libtpu: 0.0.40
codegen_flags: <defaults>
</compile_context>

<pallas_src>
import functools

import jax
import jax.numpy as jnp
from jax.experimental import pallas as pl
from jax.experimental.pallas import tpu as pltpu


def _mlp_kernel(xt_ref, w1_ref, b1_ref, w2_ref, b2_ref, w3_ref, b3_ref, o_ref):
    # xt_ref: (D, bt) bf16 -- batch on the lane axis.
    # fc1 + relu -> (H1, bt) f32 (MXU, f32 accumulation)
    h1 = jnp.dot(w1_ref[...], xt_ref[...], preferred_element_type=jnp.float32)
    h1 = jnp.maximum(h1 + b1_ref[...], 0.0)
    # fc2 + relu -> (H2, bt) f32 (MXU, f32 accumulation)
    h2 = jnp.dot(w2_ref[...], h1.astype(jnp.bfloat16),
                 preferred_element_type=jnp.float32)
    h2 = jnp.maximum(h2 + b2_ref[...], 0.0)
    # fc3 (out_features == 1): VPU multiply + sublane reduction (no MXU push),
    # result is already lane-dense (1, bt).
    z = jnp.sum(h2 * w3_ref[...], axis=0, keepdims=True) + b3_ref[...]
    o_ref[...] = jax.nn.sigmoid(z).astype(o_ref.dtype)


@functools.partial(jax.jit, static_argnames=("batch_tile",))
def net_forward(x, params, *, batch_tile=1024):
    """x: (B, D) float32 -> (B, 1) float32 sigmoid probabilities."""
    B, D = x.shape
    H1 = params["w1"].shape[0]
    H2 = params["w2"].shape[0]
    bt = batch_tile
    assert bt % 128 == 0, "batch_tile must be a multiple of 128 (lane width)"

    n_steps = pl.cdiv(B, bt)
    Bp = n_steps * bt

    # Transpose + bf16 cast fuse into one XLA pass over x (the cast already forces a
    # copy, so presenting the kernel a (D, B) lane-dense layout is free plumbing).
    xt = x.astype(jnp.bfloat16).T                     # (D, B)
    if Bp != B:
        xt = jnp.pad(xt, ((0, 0), (0, Bp - B)))       # pad ragged batch

    out = pl.pallas_call(
        _mlp_kernel,
        out_shape=jax.ShapeDtypeStruct((1, Bp), jnp.float32),
        grid_spec=pltpu.PrefetchScalarGridSpec(
            num_scalar_prefetch=0,
            grid=(n_steps,),
            in_specs=[
                pl.BlockSpec((D, bt), lambda i: (0, i)),    # x tile (streams)
                pl.BlockSpec((H1, D), lambda i: (0, 0)),    # w1  (resident, bf16)
                pl.BlockSpec((H1, 1), lambda i: (0, 0)),    # b1  (f32)
                pl.BlockSpec((H2, H1), lambda i: (0, 0)),   # w2  (resident, bf16)
                pl.BlockSpec((H2, 1), lambda i: (0, 0)),    # b2  (f32)
                pl.BlockSpec((H2, 1), lambda i: (0, 0)),    # w3 column (f32, VPU)
                pl.BlockSpec((1, 1), lambda i: (0, 0)),     # b3  (f32)
            ],
            out_specs=pl.BlockSpec((1, bt), lambda i: (0, i)),
        ),
        compiler_params=pltpu.CompilerParams(
            # Batch axis is fully independent -> sharded across TensorCores on v7x.
            dimension_semantics=("parallel",),
            # Weights ~13 KB + double-buffered ~32 KiB x tiles: far below even the
            # 16 MiB default scoped-VMEM, so no vmem_limit_bytes override is needed.
        ),
    )(
        xt,
        params["w1"].astype(jnp.bfloat16), params["b1"],
        params["w2"].astype(jnp.bfloat16), params["b2"],
        params["w3"], params["b3"],
    )

    # Lane-dense (1, Bp) -> (B, 1): reshape is a free bitcast, slice drops padding.
    return out[0, :B].reshape(B, 1)


def init_params(key, in_features, h1=64, h2=32):
    """torch.nn.Linear default init (U[-1/sqrt(fan_in), 1/sqrt(fan_in)]),
    stored in the layout the kernel expects (see header comment)."""
    def linear(k, fan_in, fan_out):
        kw, kb = jax.random.split(k)
        bound = 1.0 / (fan_in ** 0.5)
        w = jax.random.uniform(kw, (fan_out, fan_in), jnp.float32, -bound, bound)
        b = jax.random.uniform(kb, (fan_out,), jnp.float32, -bound, bound)
        return w, b

    k1, k2, k3 = jax.random.split(key, 3)
    w1, b1 = linear(k1, in_features, h1)   # (64,16), (64,)
    w2, b2 = linear(k2, h1, h2)            # (32,64), (32,)
    w3, b3 = linear(k3, h2, 1)             # (1,32),  (1,)
    return {
        "w1": w1, "b1": b1[:, None],
        "w2": w2, "b2": b2[:, None],
        "w3": w3.T, "b3": b3[None, :],     # (32,1), (1,1)
    }


def _reference(x, p):
    """Pure-JAX f32 reference matching the torch module semantics."""
    h1 = jnp.maximum(x @ p["w1"].T + p["b1"].T, 0.0)
    h2 = jnp.maximum(h1 @ p["w2"].T + p["b2"].T, 0.0)
    return jax.nn.sigmoid(h2 @ p["w3"] + p["b3"])


if __name__ == "__main__":
    key = jax.random.PRNGKey(0)
    kx, kp = jax.random.split(key)

    D = 16                      # X_train_tensor.shape[1] == 16
    params = init_params(kp, D)

    # Small sanity run (batch of 8, padded to one tile inside the wrapper).
    x_small = jax.random.normal(kx, (8, D), jnp.float32)
    out_small = jax.block_until_ready(net_forward(x_small, params))
    ref_small = _reference(x_small, params)
    assert out_small.shape == (8, 1), out_small.shape
    assert jnp.allclose(out_small, ref_small, atol=2e-2), (
        float(jnp.max(jnp.abs(out_small - ref_small))))

    # Ragged multi-tile run: exercises grid > 1, megacore sharding and the pad/slice path.
    x_big = jax.random.normal(kx, (1000, D), jnp.float32)
    out_big = jax.block_until_ready(net_forward(x_big, params, batch_tile=256))
    ref_big = _reference(x_big, params)
    assert out_big.shape == (1000, 1), out_big.shape
    assert jnp.allclose(out_big, ref_big, atol=2e-2), (
        float(jnp.max(jnp.abs(out_big - ref_big))))

    print("KERNEL_OK")
</pallas_src>

<mosaic_0001>
module attributes {stable_mosaic.version = 11 : i64} {
  func.func @_mlp_kernel(%arg0: i32, %arg1: memref<16x1024xbf16, #tpu.memory_space<vmem>>, %arg2: memref<64x16xbf16, #tpu.memory_space<vmem>>, %arg3: memref<64x1xf32, #tpu.memory_space<vmem>>, %arg4: memref<32x64xbf16, #tpu.memory_space<vmem>>, %arg5: memref<32x1xf32, #tpu.memory_space<vmem>>, %arg6: memref<32x1xf32, #tpu.memory_space<vmem>>, %arg7: memref<1x1xf32, #tpu.memory_space<vmem>>, %arg8: memref<1x1024xf32, #tpu.memory_space<vmem>>) attributes {dimension_semantics = [#tpu.dimension_semantics<parallel>], iteration_bounds = array<i64: 1>, scalar_prefetch = 0 : i64, scratch_operands = 0 : i64, tpu.core_type = #tpu.core_type<tc>, window_params = [{transform_indices = @transform_0, window_bounds = array<i64: 16, 1024>}, {pipeline_mode = #tpu.pipeline_mode<synchronous>, transform_indices = @transform_1, window_bounds = array<i64: 64, 16>}, {pipeline_mode = #tpu.pipeline_mode<synchronous>, transform_indices = @transform_2, window_bounds = array<i64: 64, 1>}, {pipeline_mode = #tpu.pipeline_mode<synchronous>, transform_indices = @transform_3, window_bounds = array<i64: 32, 64>}, {pipeline_mode = #tpu.pipeline_mode<synchronous>, transform_indices = @transform_4, window_bounds = array<i64: 32, 1>}, {pipeline_mode = #tpu.pipeline_mode<synchronous>, transform_indices = @transform_5, window_bounds = array<i64: 32, 1>}, {pipeline_mode = #tpu.pipeline_mode<synchronous>, transform_indices = @transform_6, window_bounds = array<i64: 1, 1>}, {transform_indices = @transform_7, window_bounds = array<i64: 1, 1024>}]} {
    %c0 = arith.constant 0 : index
    %c0_0 = arith.constant 0 : index
    %0 = vector.load %arg2[%c0, %c0_0] : memref<64x16xbf16, #tpu.memory_space<vmem>>, vector<64x16xbf16>
    %c0_1 = arith.constant 0 : index
    %c0_2 = arith.constant 0 : index
    %1 = vector.load %arg1[%c0_1, %c0_2] : memref<16x1024xbf16, #tpu.memory_space<vmem>>, vector<16x1024xbf16>
    %cst = arith.constant dense<0.000000e+00> : vector<64x1024xf32>
    %2 = tpu.matmul %0, %1, %cst {dimension_numbers = #tpu.dot_dimension_numbers<[1], [0], [0], [1], [0, 0, 1, 1], [], []>} : vector<64x16xbf16>, vector<16x1024xbf16>, vector<64x1024xf32> -> vector<64x1024xf32>
    %c0_3 = arith.constant 0 : index
    %c0_4 = arith.constant 0 : index
    %3 = vector.load %arg3[%c0_3, %c0_4] : memref<64x1xf32, #tpu.memory_space<vmem>>, vector<64x1xf32>
    %4 = vector.broadcast %3 : vector<64x1xf32> to vector<64x1024xf32>
    %5 = arith.addf %2, %4 : vector<64x1024xf32>
    %cst_5 = arith.constant 0.000000e+00 : f32
    %6 = vector.broadcast %cst_5 : f32 to vector<64x1024xf32>
    %7 = arith.maximumf %5, %6 : vector<64x1024xf32>
    %c0_6 = arith.constant 0 : index
    %c0_7 = arith.constant 0 : index
    %8 = vector.load %arg4[%c0_6, %c0_7] : memref<32x64xbf16, #tpu.memory_space<vmem>>, vector<32x64xbf16>
    %9 = arith.truncf %7 : vector<64x1024xf32> to vector<64x1024xbf16>
    %cst_8 = arith.constant dense<0.000000e+00> : vector<32x1024xf32>
    %10 = tpu.matmul %8, %9, %cst_8 {dimension_numbers = #tpu.dot_dimension_numbers<[1], [0], [0], [1], [0, 0, 1, 1], [], []>} : vector<32x64xbf16>, vector<64x1024xbf16>, vector<32x1024xf32> -> vector<32x1024xf32>
    %c0_9 = arith.constant 0 : index
    %c0_10 = arith.constant 0 : index
    %11 = vector.load %arg5[%c0_9, %c0_10] : memref<32x1xf32, #tpu.memory_space<vmem>>, vector<32x1xf32>
    %12 = vector.broadcast %11 : vector<32x1xf32> to vector<32x1024xf32>
    %13 = arith.addf %10, %12 : vector<32x1024xf32>
    %cst_11 = arith.constant 0.000000e+00 : f32
    %14 = vector.broadcast %cst_11 : f32 to vector<32x1024xf32>
    %15 = arith.maximumf %13, %14 : vector<32x1024xf32>
    %c0_12 = arith.constant 0 : index
    %c0_13 = arith.constant 0 : index
    %16 = vector.load %arg6[%c0_12, %c0_13] : memref<32x1xf32, #tpu.memory_space<vmem>>, vector<32x1xf32>
    %17 = vector.broadcast %16 : vector<32x1xf32> to vector<32x1024xf32>
    %18 = arith.mulf %15, %17 : vector<32x1024xf32>
    %cst_14 = arith.constant dense<0.000000e+00> : vector<1024xf32>
    %19 = vector.multi_reduction <add>, %18, %cst_14 [0] : vector<32x1024xf32> to vector<1024xf32>
    %20 = vector.shape_cast %19 : vector<1024xf32> to vector<1x1024xf32>
    %c0_15 = arith.constant 0 : index
    %c0_16 = arith.constant 0 : index
    %21 = vector.load %arg7[%c0_15, %c0_16] : memref<1x1xf32, #tpu.memory_space<vmem>>, vector<1x1xf32>
    %22 = vector.broadcast %21 : vector<1x1xf32> to vector<1x1024xf32>
    %23 = arith.addf %20, %22 : vector<1x1024xf32>
    %24 = arith.negf %23 : vector<1x1024xf32>
    %25 = math.exp %24 : vector<1x1024xf32>
    %cst_17 = arith.constant 1.000000e+00 : f32
    %26 = vector.broadcast %cst_17 : f32 to vector<1x1024xf32>
    %27 = arith.addf %26, %25 : vector<1x1024xf32>
    %28 = arith.divf %26, %27 : vector<1x1024xf32>
    %c0_18 = arith.constant 0 : index
    %c0_19 = arith.constant 0 : index
    %29 = vector.load %arg8[%c0_18, %c0_19] : memref<1x1024xf32, #tpu.memory_space<vmem>>, vector<1x1024xf32>
    tpu.vector_store %arg8[%c0_18, %c0_19], %28 {strides = array<i32>} : memref<1x1024xf32, #tpu.memory_space<vmem>>, vector<1x1024xf32>,
    return
  }
  func.func @transform_0(%arg0: i32) -> (i32, i32) {
    %c0_i32 = arith.constant 0 : i32
    %c0_i32_0 = arith.constant 0 : i32
    return %c0_i32, %arg0 : i32, i32
  }
  func.func @transform_1(%arg0: i32) -> (i32, i32) {
    %c0_i32 = arith.constant 0 : i32
    %c0_i32_0 = arith.constant 0 : i32
    %c0_i32_1 = arith.constant 0 : i32
    return %c0_i32, %c0_i32_0 : i32, i32
  }
  func.func @transform_2(%arg0: i32) -> (i32, i32) {
    %c0_i32 = arith.constant 0 : i32
    %c0_i32_0 = arith.constant 0 : i32
    %c0_i32_1 = arith.constant 0 : i32
    return %c0_i32, %c0_i32_0 : i32, i32
  }
  func.func @transform_3(%arg0: i32) -> (i32, i32) {
    %c0_i32 = arith.constant 0 : i32
    %c0_i32_0 = arith.constant 0 : i32
    %c0_i32_1 = arith.constant 0 : i32
    return %c0_i32, %c0_i32_0 : i32, i32
  }
  func.func @transform_4(%arg0: i32) -> (i32, i32) {
    %c0_i32 = arith.constant 0 : i32
    %c0_i32_0 = arith.constant 0 : i32
    %c0_i32_1 = arith.constant 0 : i32
    return %c0_i32, %c0_i32_0 : i32, i32
  }
  func.func @transform_5(%arg0: i32) -> (i32, i32) {
    %c0_i32 = arith.constant 0 : i32
    %c0_i32_0 = arith.constant 0 : i32
    %c0_i32_1 = arith.constant 0 : i32
    return %c0_i32, %c0_i32_0 : i32, i32
  }
  func.func @transform_6(%arg0: i32) -> (i32, i32) {
    %c0_i32 = arith.constant 0 : i32
    %c0_i32_0 = arith.constant 0 : i32
    %c0_i32_1 = arith.constant 0 : i32
    return %c0_i32, %c0_i32_0 : i32, i32
  }
  func.func @transform_7(%arg0: i32) -> (i32, i32) {
    %c0_i32 = arith.constant 0 : i32
    %c0_i32_0 = arith.constant 0 : i32
    return %c0_i32, %arg0 : i32, i32
  }
}

</mosaic_0001>

<bundles_post_ra>
// kernel: net_forward.1
= control target key start
LH: loop header
LB: loop body
LE: loop exit
PB: predicated region body
PF: predicated region fallthrough
CT: control target
= control target key end

     0   :  { %v1215_v3 = vmov 0   ;;  %vm153_vm0 = vcmask 130048   ;;  %vm532_vm1 = vcmask 523264   ;;  %s1883_s0 = inlined_call_operand.vmem [shape: bf16[16,1024], index: 0, kind: input, shape index: {}]   ;;  %s1884_s1 = inlined_call_operand.vmem [shape: bf16[64,16], index: 1, kind: input, shape index: {}]   ;;  %s1885_s2 = inlined_call_operand.vmem [shape: f32[64,1], index: 2, kind: input, shape index: {}]   ;;  %s1886_s4 = inlined_call_operand.vmem [shape: f32[32,1], index: 4, kind: input, shape index: {}]   ;;  %s1887_s5 = inlined_call_operand.vmem [shape: f32[32,1], index: 5, kind: input, shape index: {}]   ;;  %s1888_s6 = inlined_call_operand.<no memory space> [shape: f32[1,1], index: 6, kind: input, shape index: {}]   ;;  %s1889_s3 = inlined_call_operand.vmem [shape: bf16[32,64], index: 3, kind: input, shape index: {}]   ;;  %s1890_s7 = inlined_call_operand.vmem [shape: f32[1,1024], index: 7, kind: output, shape index: {}]  }
   0x1   :  { %v1071_v0 = vld [vmem:[%s1883_s0] sm:$0xf]  ;;  %v1169_v2 = vld [vmem:[%s1883_s0 + $0x4] sm:$0xf]  ;;  %1180 = vset.pattern.permute.xlu0 %v1215_v3  ;;  %1181 = vset.pattern.permute.xlu1 %v1215_v3  ;;  %v1079_v6 = vld [vmem:[%s1883_s0 + $0x8] sm:$0xf]  ;;  %v12_v42 = vstv %s1888_s6 }
   0x2   :  { %v1173_v1 = vld [vmem:[%s1883_s0 + $0x1c] sm:$0xf0]  ;;  %v1073_v5 = vld [vmem:[%s1883_s0 + $0x20] sm:$0xf0]  ;;  %v1174_v7 = vld [vmem:[%s1883_s0 + $0x24] sm:$0xf0]  ;;  %1182 = vset.pattern.permute.xlu2 %v1215_v3 }
   0x3   :  { %v1072_v4 = vor.u32 %v1173_v1, %v1071_v0  ;;  %v1076_v8 = vor.u32 %v1169_v2, %v1073_v5  ;;  %v1080_v9 = vor.u32 %v1174_v7, %v1079_v6  ;;  %v1170_v10 = vld [vmem:[%s1883_s0 + $0xc] sm:$0xf]  ;;  %v1283_v12 = vld [vmem:[%s1884_s1] sm:$0xff]  ;;  %v51_v14 = vld [vmem:[%s1885_s2 + $0x30] sm:$0xff]  ;;  %13 = vst [vmem:[#allocation2] sm:$0x1] %v12_v42 }
   0x4   :  { %v1081_v11 = vld [vmem:[%s1883_s0 + $0x28] sm:$0xf0]  ;;  %v49_v15 = vld [vmem:[%s1885_s2 + $0x20] sm:$0xff]  ;;  %85 = vperm.xlu0 %1180, %v51_v14   ;;  %v1095_v16 = vld [vmem:[%s1883_s0 + $0x18] sm:$0xf] }
   0x5   :  { %173 = vmatpush.bf16.msra.mxu0 %v1072_v4  ;;  %v1084_v13 = vor.u32 %v1170_v10, %v1081_v11  ;;  %202 = vmatpush.bf16.msra.mxu1 %v1076_v8  ;;  %v1176_v17 = vld [vmem:[%s1883_s0 + $0x34] sm:$0xf0]  ;;  %v1172_v18 = vld [vmem:[%s1883_s0 + $0x1c] sm:$0xf]  ;;  %v1087_v21 = vld [vmem:[%s1883_s0 + $0x10] sm:$0xf] }
   0x6   :  { %231 = vmatpush.bf16.msra.mxu2 %v1080_v9  ;;  %75 = vperm.xlu1 %1181, %v49_v15   ;;  %v1096_v19 = vor.u32 %v1176_v17, %v1095_v16  ;;  %v1097_v20 = vld [vmem:[%s1883_s0 + $0x38] sm:$0xf0]  ;;  %v1175_v23 = vld [vmem:[%s1883_s0 + $0x2c] sm:$0xf0]  ;;  %v1171_v24 = vld [vmem:[%s1883_s0 + $0x14] sm:$0xf] }
   0x7   :  { %260 = vmatpush.bf16.msra.mxu3 %v1084_v13  ;;  %v1100_v22 = vor.u32 %v1172_v18, %v1097_v20  ;;  %v1089_v25 = vld [vmem:[%s1883_s0 + $0x30] sm:$0xf0]  ;;  %v1088_v26 = vor.u32 %v1175_v23, %v1087_v21  ;;  %v52_v28 = vld [vmem:[%s1885_s2 + $0x38] sm:$0xff]  ;;  %v50_v29 = vld [vmem:[%s1885_s2 + $0x28] sm:$0xff] }
   0x8   :  { %1101 = vmatmul.msk.bf16.vlgmr.msra.gmra.mxu0 %vm153_vm0, %v1283_v12  ;;  %1105 = vmatmul.msk.bf16.vlgmr.msra.gmra.mxu1 %vm153_vm0, %v1283_v12  ;;  %v1092_v27 = vor.u32 %v1171_v24, %v1089_v25  ;;  %v1166_v30 = vld [vmem:[%s1884_s1 + $0x8] sm:$0xff]  ;;  %v45_v31 = vld [vmem:[%s1885_s2] sm:$0xff]  ;;  %v47_v33 = vld [vmem:[%s1885_s2 + $0x10] sm:$0xff] }
   0x9   :  { %1109 = vmatmul.msk.bf16.vlgmr.msra.gmra.mxu2 %vm153_vm0, %v1283_v12  ;;  %289 = vmatpush.bf16.msrb.mxu0 %v1088_v26  ;;  %v46_v32 = vld [vmem:[%s1885_s2 + $0x8] sm:$0xff]  ;;  %v48_v35 = vld [vmem:[%s1885_s2 + $0x18] sm:$0xff]  ;;  %v1167_v36 = vld [vmem:[%s1884_s1 + $0x10] sm:$0xff] }
   0xa   :  { %1113 = vmatmul.msk.bf16.vlgmr.msra.gmra.mxu3 %vm153_vm0, %v1283_v12  ;;  %347 = vmatpush.bf16.msrb.mxu2 %v1096_v19  ;;  %v499_v34 = vld [vmem:[%s1886_s4 + $0x8] sm:$0xff]  ;;  %v723_v37 = vld [vmem:[%s1887_s5] sm:$0xff]  ;;  %v500_v38 = vld [vmem:[%s1886_s4 + $0x10] sm:$0xff] }
   0xb   :  { %376 = vmatpush.bf16.msrb.mxu3 %v1100_v22  ;;  %318 = vmatpush.bf16.msrb.mxu1 %v1092_v27  ;;  %v726_v39 = vld [vmem:[%s1887_s5 + $0x18] sm:$0xff]  ;;  %v724_v40 = vld [vmem:[%s1887_s5 + $0x8] sm:$0xff]  ;;  %v851_v43 = vld [vmem:[#allocation2] sm:$0x1] }
   0xc   :  { %90 = vperm.xlu0 %1180, %v52_v28   ;;  %65 = vperm.xlu2 %1182, %v47_v33   ;;  %v1168_v41 = vld [vmem:[%s1884_s1 + $0x18] sm:$0xff]  ;;  %v498_v44 = vld [vmem:[%s1886_s4] sm:$0xff]  ;;  %v725_v46 = vld [vmem:[%s1887_s5 + $0x10] sm:$0xff] }
   0xd   :  { %v501_v45 = vld [vmem:[%s1886_s4 + $0x18] sm:$0xff] }
   0xe   :  { %80 = vperm.xlu1 %1181, %v50_v29  }
  0x14   :  { %55 = vperm.xlu0 %1180, %v45_v31   ;;  %70 = vperm.xlu2 %1182, %v48_v35  }
  0x16   :  { %60 = vperm.xlu1 %1181, %v46_v32  }
  0x18   :  { %1102 = vmatmul.msk.bf16.gmra.mxu0 %vm153_vm0, %v1166_v30  ;;  %1106 = vmatmul.msk.bf16.gmra.mxu1 %vm153_vm0, %v1166_v30 }
  0x19   :  { %1110 = vmatmul.msk.bf16.gmra.mxu2 %vm153_vm0, %v1166_v30 }
  0x1a   :  { %1114 = vmatmul.msk.bf16.gmra.mxu3 %vm153_vm0, %v1166_v30 }
  0x1c   :  { %509 = vperm.xlu0 %1180, %v499_v34   ;;  %504 = vperm.xlu2 %1182, %v498_v44  }
  0x1e   :  { %514 = vperm.xlu1 %1181, %v500_v38  }
  0x24   :  { %729 = vperm.xlu0 %1180, %v723_v37   ;;  %519 = vperm.xlu2 %1182, %v501_v45  }
  0x26   :  { %734 = vperm.xlu1 %1181, %v724_v40  }
  0x28   :  { %1103 = vmatmul.msk.bf16.gmra.mxu0 %vm153_vm0, %v1167_v36  ;;  %1107 = vmatmul.msk.bf16.gmra.mxu1 %vm153_vm0, %v1167_v36 }
  0x29   :  { %1111 = vmatmul.msk.bf16.gmra.mxu2 %vm153_vm0, %v1167_v36 }
  0x2a   :  { %1115 = vmatmul.msk.bf16.gmra.mxu3 %vm153_vm0, %v1167_v36 }
  0x2c   :  { %744 = vperm.xlu0 %1180, %v726_v39   ;;  %739 = vperm.xlu2 %1182, %v725_v46  }
  0x2e   :  { %854 = vperm.xlu1 %1181, %v851_v43  }
  0x38   :  { %1104 = vmatmul.msk.bf16.gmra.mxu0 %vm153_vm0, %v1168_v41  ;;  %1108 = vmatmul.msk.bf16.gmra.mxu1 %vm153_vm0, %v1168_v41 }
  0x39   :  { %1112 = vmatmul.msk.bf16.gmra.mxu2 %vm153_vm0, %v1168_v41 }
  0x3a   :  { %1116 = vmatmul.msk.bf16.gmra.mxu3 %vm153_vm0, %v1168_v41 }
  0x48   :  { %1117 = vmatmul.msk.bf16.vlgmr.msrb.gmra.mxu0 %vm153_vm0, %v1283_v12  ;;  %1121 = vmatmul.msk.bf16.vlgmr.msrb.gmra.mxu1 %vm153_vm0, %v1283_v12 }
  0x49   :  { %1125 = vmatmul.msk.bf16.vlgmr.msrb.gmra.mxu2 %vm153_vm0, %v1283_v12 }
  0x4a   :  { %1129 = vmatmul.msk.bf16.vlgmr.msrb.gmra.mxu3 %vm153_vm0, %v1283_v12 }
  0x58   :  { %1118 = vmatmul.msk.bf16.gmra.mxu0 %vm153_vm0, %v1166_v30  ;;  %1122 = vmatmul.msk.bf16.gmra.mxu1 %vm153_vm0, %v1166_v30 }
  0x59   :  { %1126 = vmatmul.msk.bf16.gmra.mxu2 %vm153_vm0, %v1166_v30 }
  0x5a   :  { %1130 = vmatmul.msk.bf16.gmra.mxu3 %vm153_vm0, %v1166_v30 }
  0x66   :  { %v1437_v8 = vpop.permute.xlu2 %65 }
  0x68   :  { %1119 = vmatmul.msk.bf16.gmra.mxu0 %vm153_vm0, %v1167_v36  ;;  %1123 = vmatmul.msk.bf16.gmra.mxu1 %vm153_vm0, %v1167_v36 }
  0x69   :  { %1127 = vmatmul.msk.bf16.gmra.mxu2 %vm153_vm0, %v1167_v36 }
  0x6a   :  { %1131 = vmatmul.msk.bf16.gmra.mxu3 %vm153_vm0, %v1167_v36 }
  0x6e   :  { %v1448_v21 = vpop.permute.xlu2 %70 }
  0x76   :  { %v1429_v1 = vpop.permute.xlu0 %85 }
  0x78   :  { %1120 = vmatmul.msk.bf16.gmra.mxu0 %vm153_vm0, %v1168_v41  ;;  %1124 = vmatmul.msk.bf16.gmra.mxu1 %vm153_vm0, %v1168_v41  ;;  %v1431_v2 = vpop.permute.xlu1 %75 }
  0x79   :  { %1128 = vmatmul.msk.bf16.gmra.mxu2 %vm153_vm0, %v1168_v41 }
  0x7a   :  { %1132 = vmatmul.msk.bf16.gmra.mxu3 %vm153_vm0, %v1168_v41 }
  0x7e   :  { %v1435_v7 = vpop.permute.xlu0 %90 }
  0x80   :  { %v1439_v13 = vpop.permute.xlu1 %80 }
  0x85   :  { %v175_v47 = vpop.f32.mrf.mxu0  ;;  %v204_v48 = vpop.f32.mrf.mxu1 }
  0x86   :  { %v1443_v16 = vpop.permute.xlu0 %55 }
  0x87   :  { %v1446_v20 = vadd.f32 %v175_v47, %v1443_v16  ;;  %v1458_v33 = vadd.f32 %v204_v48, %v1443_v16 }
  0x88   :  { %v1460_v34 = vpop.permute.xlu1 %60 }
  0x89   :  { %v398_v38 = vmax.f32 %v1446_v20, 0.0 }
  0x8c   :  { %v1409_v49 = vpop.f32.mrf.mxu2 }
  0x8d   :  { %v1411_v50 = vpop.f32.mrf.mxu3  ;;  %v1413_v51 = vpop.f32.mrf.mxu0 }
  0x8e   :  { %v1415_v52 = vpop.f32.mrf.mxu1 }
  0x94   :  { %v1417_v53 = vpop.f32.mrf.mxu2 }
  0x95   :  { %v1419_v54 = vpop.f32.mrf.mxu3  ;;  %v180_v55 = vpop.f32.mrf.mxu0 }
  0x96   :  { %v209_v56 = vpop.f32.mrf.mxu1  ;;  %v181_v32 = vadd.f32 %v180_v55, %v1437_v8 }
  0x97   :  { %v210_v37 = vadd.f32 %v209_v56, %v1437_v8  ;;  %v178_v56 = vadd.f32 %v1413_v51, %v1460_v34 }
  0x98   :  { %v414_v55 = vmax.f32 %v181_v32, 0.0 }
  0x9c   :  { %v1421_v57 = vpop.f32.mrf.mxu2 }
  0x9d   :  { %v1423_v58 = vpop.f32.mrf.mxu3  ;;  %v182_v59 = vpop.f32.mrf.mxu0 }
  0x9e   :  { %v211_v60 = vpop.f32.mrf.mxu1  ;;  %v183_v36 = vadd.f32 %v182_v59, %v1448_v21  ;;  %v207_v59 = vadd.f32 %v1415_v52, %v1460_v34 }
  0x9f   :  { %v212_v42 = vadd.f32 %v211_v60, %v1448_v21 }
  0xa1   :  { %v423_v51 = vmax.f32 %v212_v42, 0.0  ;;  %v265_v42 = vadd.f32 %v1419_v54, %v1460_v34  ;;  %v263_v54 = vadd.f32 %v1411_v50, %v1443_v16 }
  0xa4   :  { %v1425_v61 = vpop.f32.mrf.mxu2 }
  0xa5   :  { %v1427_v62 = vpop.f32.mrf.mxu3  ;;  %v185_v63 = vpop.f32.mrf.mxu0 }
  0xa6   :  { %v214_v0 = vpop.f32.mrf.mxu1  ;;  %v186_v22 = vadd.f32 %v185_v63, %v1431_v2 }
  0xa7   :  { %v215_v27 = vadd.f32 %v214_v0, %v1431_v2 }
  0xa8   :  { %v430_v39 = vmax.f32 %v186_v22, 0.0 }
  0xa9   :  { %v431_v43 = vmax.f32 %v215_v27, 0.0 }
  0xac   :  { %v243_v3 = vpop.f32.mrf.mxu2 }
  0xad   :  { %v1433_v4 = vpop.f32.mrf.mxu3  ;;  %v187_v5 = vpop.f32.mrf.mxu0  ;;  %v244_v52 = vadd.f32 %v243_v3, %v1431_v2  ;;  %v270_v3 = vadd.f32 %v1427_v62, %v1448_v21  ;;  %v236_v62 = vadd.f32 %v1417_v53, %v1460_v34  ;;  %v234_v53 = vadd.f32 %v1409_v49, %v1443_v16 }
  0xae   :  { %v216_v6 = vpop.f32.mrf.mxu1  ;;  %v188_v23 = vadd.f32 %v187_v5, %v1439_v13  ;;  %v273_v22 = vadd.f32 %v1433_v4, %v1431_v2  ;;  %v239_v4 = vadd.f32 %v1421_v57, %v1437_v8 }
  0xaf   :  { %v217_v28 = vadd.f32 %v216_v6, %v1439_v13  ;;  %v422_v6 = vmax.f32 %v183_v36, 0.0  ;;  %v432_v32 = vmax.f32 %v244_v52, 0.0  ;;  %v408_v20 = vmax.f32 %v236_v62, 0.0 }
  0xb0   :  { %v438_v40 = vmax.f32 %v188_v23, 0.0  ;;  %v433_v36 = vmax.f32 %v273_v22, 0.0 }
  0xb1   :  { %v439_v44 = vmax.f32 %v217_v28, 0.0  ;;  %v406_v28 = vmax.f32 %v178_v56, 0.0  ;;  %v409_v56 = vmax.f32 %v265_v42, 0.0 }
  0xb4   :  { %v245_v9 = vpop.f32.mrf.mxu2 }
  0xb5   :  { %v274_v10 = vpop.f32.mrf.mxu3  ;;  %v190_v11 = vpop.f32.mrf.mxu0  ;;  %v246_v63 = vadd.f32 %v245_v9, %v1439_v13 }
  0xb6   :  { %v219_v12 = vpop.f32.mrf.mxu1  ;;  %v191_v14 = vadd.f32 %v190_v11, %v1429_v1  ;;  %v415_v11 = vmax.f32 %v210_v37, 0.0 }
  0xb7   :  { %v220_v15 = vadd.f32 %v219_v12, %v1429_v1  ;;  %v482_v12 = vpack.c.bf16 %v438_v40, %v430_v39 }
  0xb8   :  { %v446_v24 = vmax.f32 %v191_v14, 0.0  ;;  %v275_v14 = vadd.f32 %v274_v10, %v1439_v13  ;;  %v241_v10 = vadd.f32 %v1425_v61, %v1448_v21  ;;  %v268_v61 = vadd.f32 %v1423_v58, %v1437_v8 }
  0xb9   :  { %v447_v29 = vmax.f32 %v220_v15, 0.0 }
  0xba   :  { %v424_v39 = vmax.f32 %v241_v10, 0.0 }
  0xbc   :  { %v248_v17 = vpop.f32.mrf.mxu2 }
  0xbd   :  { %v277_v18 = vpop.f32.mrf.mxu3  ;;  %v192_v19 = vpop.f32.mrf.mxu0  ;;  %v249_v45 = vadd.f32 %v248_v17, %v1429_v1 }
  0xbe   :  { %v193_v25 = vadd.f32 %v192_v19, %v1435_v7  ;;  %v221_v26 = vpop.f32.mrf.mxu1  ;;  %v278_v47 = vadd.f32 %v277_v18, %v1429_v1  ;;  %v483_v18 = vpack.c.bf16 %v439_v44, %v431_v43  ;;  %v425_v43 = vmax.f32 %v270_v3, 0.0 }
  0xbf   :  { %v222_v30 = vadd.f32 %v221_v26, %v1435_v7  ;;  %v448_v9 = vmax.f32 %v249_v45, 0.0  ;;  %v440_v26 = vmax.f32 %v246_v63, 0.0  ;;  %v466_v45 = vpack.c.bf16 %v406_v28, %v398_v38 }
  0xc0   :  { %v454_v31 = vmax.f32 %v193_v25, 0.0  ;;  %v449_v23 = vmax.f32 %v278_v47, 0.0  ;;  %v399_v25 = vmax.f32 %v1458_v33, 0.0  ;;  %v407_v33 = vmax.f32 %v207_v59, 0.0 }
  0xc1   :  { %v455_v35 = vmax.f32 %v222_v30, 0.0  ;;  %v484_v40 = vpack.c.bf16 %v440_v26, %v432_v32  ;;  %v400_v59 = vmax.f32 %v234_v53, 0.0  ;;  %v401_v63 = vmax.f32 %v263_v54, 0.0 }
  0xc2   :  { %v490_v41 = vpack.c.bf16 %v454_v31, %v446_v24  ;;  %v474_v31 = vpack.c.bf16 %v422_v6, %v414_v55  ;;  %v467_v47 = vpack.c.bf16 %v407_v33, %v399_v25  ;;  %v417_v55 = vmax.f32 %v268_v61, 0.0 }
  0xc3   :  { %v491_v46 = vpack.c.bf16 %v455_v35, %v447_v29  ;;  %v441_v29 = vmax.f32 %v275_v14, 0.0  ;;  %v475_v35 = vpack.c.bf16 %v423_v51, %v415_v11  ;;  %v468_v50 = vpack.c.bf16 %v408_v20, %v400_v59 }
  0xc4   :  { %v250_v48 = vpop.f32.mrf.mxu2  ;;  %543 = vmatpush.bf16.msra.mxu0 %v490_v41  ;;  %v477_v49 = vpack.c.bf16 %v425_v43, %v417_v55  ;;  %v469_v11 = vpack.c.bf16 %v409_v56, %v401_v63 }
  0xc5   :  { %v251_v60 = vadd.f32 %v250_v48, %v1435_v7  ;;  %v279_v0 = vpop.f32.mrf.mxu3  ;;  %562 = vmatpush.bf16.msra.mxu1 %v491_v46  ;;  %v1474_v5 = vpop.f32.mrf.mxu0  ;;  %v485_v58 = vpack.c.bf16 %v441_v29, %v433_v36  ;;  %v416_v46 = vmax.f32 %v239_v4, 0.0  ;;  %v1511_v48 = vld [vmem:[%s1889_s3] sm:$0xff] }
  0xc6   :  { %v280_v15 = vadd.f32 %v279_v0, %v1435_v7  ;;  %v1478_v17 = vpop.f32.mrf.mxu1 }
  0xc7   :  { %v456_v19 = vmax.f32 %v251_v60, 0.0  ;;  %v476_v38 = vpack.c.bf16 %v424_v39, %v416_v46  ;;  %v1556_v61 = vadd.f32 %v1478_v17, %v1443_v16 }
  0xc8   :  { %v457_v24 = vmax.f32 %v280_v15, 0.0  ;;  %544 = vmatpush.bf16.msra.mxu0 %v482_v12 }
  0xc9   :  { %v492_v27 = vpack.c.bf16 %v456_v19, %v448_v9  ;;  %563 = vmatpush.bf16.msra.mxu1 %v483_v18  ;;  %v1534_v18 = vld [vmem:[%s1889_s3 + $0x8] sm:$0xff] }
  0xca   :  { %v493_v30 = vpack.c.bf16 %v457_v24, %v449_v23 }
  0xcb   :  { %581 = vmatpush.bf16.msra.mxu2 %v492_v27 }
  0xcc   :  { %600 = vmatpush.bf16.msra.mxu3 %v493_v30  ;;  %v1492_v37 = vpop.f32.mrf.mxu2  ;;  %545 = vmatpush.bf16.msra.mxu0 %v474_v31  ;;  %v1550_v30 = vadd.f32 %v1474_v5, %v1443_v16 }
  0xcd   :  { %v1496_v41 = vpop.f32.mrf.mxu3  ;;  %564 = vmatpush.bf16.msra.mxu1 %v475_v35  ;;  %v1498_v57 = vpop.f32.mrf.mxu0 }
  0xce   :  { %v1502_v44 = vpop.f32.mrf.mxu1  ;;  %v294_v20 = vadd.f32 %v1498_v57, %v1460_v34 }
  0xcf   :  { %582 = vmatpush.bf16.msra.mxu2 %v484_v40  ;;  %v402_v40 = vmax.f32 %v1550_v30, 0.0  ;;  %v323_v59 = vadd.f32 %v1502_v44, %v1460_v34 }
  0xd0   :  { %601 = vmatpush.bf16.msra.mxu3 %v485_v58  ;;  %546 = vmatpush.bf16.msra.mxu0 %v466_v45 }
  0xd1   :  { %565 = vmatpush.bf16.msra.mxu1 %v467_v47 }
  0xd3   :  { %583 = vmatpush.bf16.msra.mxu2 %v476_v38  ;;  %1141 = vmatmul.msk.bf16.vlgmr.msra.gmra.mxu0 %vm532_vm1, %v1511_v48 }
  0xd4   :  { %602 = vmatpush.bf16.msra.mxu3 %v477_v49  ;;  %v1517_v60 = vpop.f32.mrf.mxu2  ;;  %1143 = vmatmul.msk.bf16.vlgmr.msra.gmra.mxu1 %vm532_vm1, %v1511_v48 }
  0xd5   :  { %v1521_v0 = vpop.f32.mrf.mxu3  ;;  %v296_v6 = vpop.f32.mrf.mxu0 }
  0xd6   :  { %v325_v12 = vpop.f32.mrf.mxu1  ;;  %v297_v5 = vadd.f32 %v296_v6, %v1437_v8 }
  0xd7   :  { %584 = vmatpush.bf16.msra.mxu2 %v468_v50  ;;  %v326_v58 = vadd.f32 %v325_v12, %v1437_v8 }
  0xd8   :  { %603 = vmatpush.bf16.msra.mxu3 %v469_v11  ;;  %v418_v11 = vmax.f32 %v297_v5, 0.0  ;;  %v410_v5 = vmax.f32 %v294_v20, 0.0 }
  0xd9   :  { %v419_v12 = vmax.f32 %v326_v58, 0.0 }
  0xda   :  { %1145 = vmatmul.msk.bf16.vlgmr.msra.gmra.mxu2 %vm532_vm1, %v1511_v48 }
  0xdb   :  { %1147 = vmatmul.msk.bf16.vlgmr.msra.gmra.mxu3 %vm532_vm1, %v1511_v48 }
  0xdc   :  { %v1527_v14 = vpop.f32.mrf.mxu2 }
  0xdd   :  { %v1529_v15 = vpop.f32.mrf.mxu3  ;;  %v298_v51 = vpop.f32.mrf.mxu0 }
  0xde   :  { %v327_v52 = vpop.f32.mrf.mxu1  ;;  %v299_v46 = vadd.f32 %v298_v51, %v1448_v21 }
  0xdf   :  { %v328_v38 = vadd.f32 %v327_v52, %v1448_v21 }
  0xe1   :  { %v427_v44 = vmax.f32 %v328_v38, 0.0 }
  0xe3   :  { %1142 = vmatmul.msk.bf16.gmra.mxu0 %vm532_vm1, %v1534_v18 }
  0xe4   :  { %v1538_v9 = vpop.f32.mrf.mxu2  ;;  %1144 = vmatmul.msk.bf16.gmra.mxu1 %vm532_vm1, %v1534_v18 }
  0xe5   :  { %v1542_v19 = vpop.f32.mrf.mxu3  ;;  %v301_v22 = vpop.f32.mrf.mxu0 }
  0xe6   :  { %v330_v23 = vpop.f32.mrf.mxu1  ;;  %v302_v45 = vadd.f32 %v301_v22, %v1431_v2 }
  0xe7   :  { %v331_v47 = vadd.f32 %v330_v23, %v1431_v2 }
  0xe8   :  { %v434_v51 = vmax.f32 %v302_v45, 0.0  ;;  %v411_v45 = vmax.f32 %v323_v59, 0.0 }
  0xe9   :  { %v435_v57 = vmax.f32 %v331_v47, 0.0 }
  0xea   :  { %1146 = vmatmul.msk.bf16.gmra.mxu2 %vm532_vm1, %v1534_v18 }
  0xeb   :  { %1148 = vmatmul.msk.bf16.gmra.mxu3 %vm532_vm1, %v1534_v18 }
  0xec   :  { %v359_v24 = vpop.f32.mrf.mxu2 }
  0xed   :  { %v388_v25 = vpop.f32.mrf.mxu3  ;;  %v303_v10 = vpop.f32.mrf.mxu0 }
  0xee   :  { %v332_v26 = vpop.f32.mrf.mxu1  ;;  %v304_v36 = vadd.f32 %v303_v10, %v1439_v13  ;;  %v426_v10 = vmax.f32 %v299_v46, 0.0 }
  0xef   :  { %v333_v42 = vadd.f32 %v332_v26, %v1439_v13 }
  0xf0   :  { %v442_v56 = vmax.f32 %v304_v36, 0.0  ;;  %v403_v36 = vmax.f32 %v1556_v61, 0.0 }
  0xf1   :  { %v443_v63 = vmax.f32 %v333_v42, 0.0  ;;  %v357_v42 = vadd.f32 %v1538_v9, %v1448_v21 }
  0xf3   :  { %v428_v46 = vmax.f32 %v357_v42, 0.0 }
  0xf4   :  { %v361_v27 = vpop.f32.mrf.mxu2 }
  0xf5   :  { %v390_v28 = vpop.f32.mrf.mxu3  ;;  %v306_v3 = vpop.f32.mrf.mxu0  ;;  %v362_v52 = vadd.f32 %v361_v27, %v1439_v13 }
  0xf6   :  { %v335_v29 = vpop.f32.mrf.mxu1  ;;  %v307_v31 = vadd.f32 %v306_v3, %v1429_v1 }
  0xf7   :  { %v336_v32 = vadd.f32 %v335_v29, %v1429_v1  ;;  %v486_v29 = vpack.c.bf16 %v442_v56, %v434_v51  ;;  %v1618_v51 = vpop.permute.xlu0 %509 }
  0xf8   :  { %v450_v53 = vmax.f32 %v307_v31, 0.0  ;;  %v391_v31 = vadd.f32 %v390_v28, %v1439_v13 }
  0xf9   :  { %v451_v54 = vmax.f32 %v336_v32, 0.0  ;;  %v360_v32 = vadd.f32 %v359_v24, %v1431_v2  ;;  %v386_v24 = vadd.f32 %v1542_v19, %v1448_v21  ;;  %v470_v19 = vpack.c.bf16 %v410_v5, %v402_v40 }
  0xfa   :  { %v445_v28 = vmax.f32 %v391_v31, 0.0 }
  0xfb   :  { %v436_v61 = vmax.f32 %v360_v32, 0.0  ;;  %v429_v47 = vmax.f32 %v386_v24, 0.0 }
  0xfc   :  { %v364_v4 = vpop.f32.mrf.mxu2 }
  0xfd   :  { %v393_v35 = vpop.f32.mrf.mxu3  ;;  %v308_v33 = vpop.f32.mrf.mxu0  ;;  %v365_v50 = vadd.f32 %v364_v4, %v1429_v1 }
  0xfe   :  { %v309_v62 = vadd.f32 %v308_v33, %v1435_v7  ;;  %v337_v39 = vpop.f32.mrf.mxu1  ;;  %v394_v22 = vadd.f32 %v393_v35, %v1429_v1  ;;  %v487_v33 = vpack.c.bf16 %v443_v63, %v435_v57 }
  0xff   :  { %v338_v43 = vadd.f32 %v337_v39, %v1435_v7  ;;  %v452_v1 = vmax.f32 %v365_v50, 0.0 }
 0x100   :  { %v458_v17 = vmax.f32 %v309_v62, 0.0  ;;  %v389_v62 = vadd.f32 %v388_v25, %v1431_v2  ;;  %v453_v27 = vmax.f32 %v394_v22, 0.0  ;;  %v355_v2 = vadd.f32 %v1527_v14, %v1437_v8 }
 0x101   :  { %v459_v55 = vmax.f32 %v338_v43, 0.0  ;;  %v444_v43 = vmax.f32 %v362_v52, 0.0  ;;  %v479_v25 = vpack.c.bf16 %v427_v44, %v419_v12  ;;  %v381_v14 = vadd.f32 %v1521_v0, %v1460_v34 }
 0x102   :  { %v494_v49 = vpack.c.bf16 %v458_v17, %v450_v53  ;;  %v384_v53 = vadd.f32 %v1529_v15, %v1437_v8  ;;  %v437_v9 = vmax.f32 %v389_v62, 0.0  ;;  %v352_v17 = vadd.f32 %v1517_v60, %v1460_v34 }
 0x103   :  { %v495_v6 = vpack.c.bf16 %v459_v55, %v451_v54  ;;  %v488_v21 = vpack.c.bf16 %v444_v43, %v436_v61  ;;  %v350_v8 = vadd.f32 %v1492_v37, %v1443_v16  ;;  %v471_v15 = vpack.c.bf16 %v411_v45, %v403_v36 }
 0x104   :  { %v366_v23 = vpop.f32.mrf.mxu2  ;;  %619 = vmatpush.bf16.msrb.mxu0 %v494_v49  ;;  %v489_v54 = vpack.c.bf16 %v445_v28, %v437_v9  ;;  %v420_v55 = vmax.f32 %v355_v2, 0.0  ;;  %v379_v60 = vadd.f32 %v1496_v41, %v1443_v16  ;;  %v421_v20 = vmax.f32 %v384_v53, 0.0 }
 0x105   :  { %v367_v26 = vadd.f32 %v366_v23, %v1435_v7  ;;  %v395_v3 = vpop.f32.mrf.mxu3  ;;  %638 = vmatpush.bf16.msrb.mxu1 %v495_v6  ;;  %v412_v38 = vmax.f32 %v352_v17, 0.0  ;;  %v413_v40 = vmax.f32 %v381_v14, 0.0  ;;  %v404_v34 = vmax.f32 %v350_v8, 0.0  ;;  %v1620_v23 = vpop.permute.xlu1 %514 }
 0x106   :  { %v396_v4 = vadd.f32 %v395_v3, %v1435_v7  ;;  %v478_v7 = vpack.c.bf16 %v426_v10, %v418_v11  ;;  %v480_v30 = vpack.c.bf16 %v428_v46, %v420_v55  ;;  %v481_v56 = vpack.c.bf16 %v429_v47, %v421_v20  ;;  %v1625_v3 = vpop.permute.xlu0 %729 }
 0x107   :  { %v460_v35 = vmax.f32 %v367_v26, 0.0  ;;  %v405_v37 = vmax.f32 %v379_v60, 0.0  ;;  %v472_v0 = vpack.c.bf16 %v412_v38, %v404_v34 }
 0x108   :  { %v461_v39 = vmax.f32 %v396_v4, 0.0  ;;  %620 = vmatpush.bf16.msrb.mxu0 %v486_v29 }
 0x109   :  { %v496_v13 = vpack.c.bf16 %v460_v35, %v452_v1  ;;  %639 = vmatpush.bf16.msrb.mxu1 %v487_v33  ;;  %v473_v16 = vpack.c.bf16 %v413_v40, %v405_v37 }
 0x10a   :  { %v497_v58 = vpack.c.bf16 %v461_v39, %v453_v27 }
 0x10b   :  { %657 = vmatpush.bf16.msrb.mxu2 %v496_v13 }
 0x10c   :  { %676 = vmatpush.bf16.msrb.mxu3 %v497_v58  ;;  %621 = vmatpush.bf16.msrb.mxu0 %v478_v7 }
 0x10d   :  { %640 = vmatpush.bf16.msrb.mxu1 %v479_v25  ;;  %v1631_v36 = vpop.permute.xlu1 %734 }
 0x10e   :  { %v1645_v9 = vpop.permute.xlu0 %744 }
 0x10f   :  { %658 = vmatpush.bf16.msrb.mxu2 %v488_v21 }
 0x110   :  { %677 = vmatpush.bf16.msrb.mxu3 %v489_v54  ;;  %622 = vmatpush.bf16.msrb.mxu0 %v470_v19 }
 0x111   :  { %641 = vmatpush.bf16.msrb.mxu1 %v471_v15 }
 0x113   :  { %659 = vmatpush.bf16.msrb.mxu2 %v480_v30  ;;  %1149 = vmatmul.msk.bf16.vlgmr.msrb.gmra.mxu0 %vm532_vm1, %v1511_v48 }
 0x114   :  { %678 = vmatpush.bf16.msrb.mxu3 %v481_v56  ;;  %1151 = vmatmul.msk.bf16.vlgmr.msrb.gmra.mxu1 %vm532_vm1, %v1511_v48 }
 0x117   :  { %660 = vmatpush.bf16.msrb.mxu2 %v472_v0 }
 0x118   :  { %679 = vmatpush.bf16.msrb.mxu3 %v473_v16 }
 0x11a   :  { %1153 = vmatmul.msk.bf16.vlgmr.msrb.gmra.mxu2 %vm532_vm1, %v1511_v48 }
 0x11b   :  { %1155 = vmatmul.msk.bf16.vlgmr.msrb.gmra.mxu3 %vm532_vm1, %v1511_v48  ;;  %v1616_v48 = vpop.permute.xlu2 %504 }
 0x123   :  { %1150 = vmatmul.msk.bf16.gmra.mxu0 %vm532_vm1, %v1534_v18  ;;  %v1622_v52 = vpop.permute.xlu2 %519 }
 0x124   :  { %1152 = vmatmul.msk.bf16.gmra.mxu1 %vm532_vm1, %v1534_v18 }
 0x12a   :  { %1154 = vmatmul.msk.bf16.gmra.mxu2 %vm532_vm1, %v1534_v18 }
 0x12b   :  { %1156 = vmatmul.msk.bf16.gmra.mxu3 %vm532_vm1, %v1534_v18  ;;  %v1637_v7 = vpop.permute.xlu2 %739 }
 0x150   :  { %v548_v59 = vpop.f32.mrf.mxu0 }
 0x151   :  { %v567_v41 = vpop.f32.mrf.mxu1  ;;  %v549_v24 = vadd.f32 %v548_v59, %v1616_v48 }
 0x152   :  { %v568_v29 = vadd.f32 %v567_v41, %v1616_v48 }
 0x153   :  { %v691_v15 = vmax.f32 %v549_v24, 0.0 }
 0x154   :  { %v692_v33 = vmax.f32 %v568_v29, 0.0 }
 0x155   :  { %v747_v59 = vmul.f32 %v1625_v3, %v691_v15 }
 0x156   :  { %v748_v45 = vmul.f32 %v1625_v3, %v692_v33 }
 0x158   :  { %v550_v11 = vpop.f32.mrf.mxu0 }
 0x159   :  { %v569_v50 = vpop.f32.mrf.mxu1  ;;  %v551_v62 = vadd.f32 %v550_v11, %v1618_v51 }
 0x15a   :  { %v570_v18 = vadd.f32 %v569_v50, %v1618_v51 }
 0x15b   :  { %v699_v17 = vmax.f32 %v551_v62, 0.0 }
 0x15c   :  { %v700_v4 = vmax.f32 %v570_v18, 0.0 }
 0x15d   :  { %v586_v49 = vpop.f32.mrf.mxu2  ;;  %v755_v56 = vmul.f32 %v1631_v36, %v699_v17 }
 0x15e   :  { %v605_v63 = vpop.f32.mrf.mxu3  ;;  %v756_v39 = vmul.f32 %v1631_v36, %v700_v4  ;;  %v587_v5 = vadd.f32 %v586_v49, %v1616_v48 }
 0x15f   :  { %v606_v46 = vadd.f32 %v605_v63, %v1616_v48 }
 0x160   :  { %v553_v57 = vpop.f32.mrf.mxu0  ;;  %v788_v14 = vadd.f32 %v756_v39, %v748_v45  ;;  %v693_v47 = vmax.f32 %v587_v5, 0.0 }
 0x161   :  { %v572_v22 = vpop.f32.mrf.mxu1  ;;  %v554_v28 = vadd.f32 %v553_v57, %v1620_v23  ;;  %v694_v34 = vmax.f32 %v606_v46, 0.0 }
 0x162   :  { %v573_v31 = vadd.f32 %v572_v22, %v1620_v23  ;;  %v749_v16 = vmul.f32 %v1625_v3, %v693_v47  ;;  %v779_v22 = vadd.f32 %v755_v56, %v747_v59 }
 0x163   :  { %v707_v55 = vmax.f32 %v554_v28, 0.0 }
 0x164   :  { %v708_v1 = vmax.f32 %v573_v31, 0.0 }
 0x165   :  { %v588_v6 = vpop.f32.mrf.mxu2  ;;  %v763_v63 = vmul.f32 %v1637_v7, %v707_v55  ;;  %v855_v55 = vpop.permute.xlu1 %854 }
 0x166   :  { %v607_v12 = vpop.f32.mrf.mxu3  ;;  %v589_v35 = vadd.f32 %v588_v6, %v1618_v51  ;;  %v764_v2 = vmul.f32 %v1637_v7, %v708_v1 }
 0x167   :  { %v608_v58 = vadd.f32 %v607_v12, %v1618_v51  ;;  %v780_v29 = vadd.f32 %v779_v22, %v763_v63 }
 0x168   :  { %v555_v42 = vpop.f32.mrf.mxu0  ;;  %v701_v25 = vmax.f32 %v589_v35, 0.0  ;;  %v789_v38 = vadd.f32 %v788_v14, %v764_v2 }
 0x169   :  { %v574_v44 = vpop.f32.mrf.mxu1  ;;  %v556_v21 = vadd.f32 %v555_v42, %v1622_v52  ;;  %v702_v60 = vmax.f32 %v608_v58, 0.0 }
 0x16a   :  { %v575_v32 = vadd.f32 %v574_v44, %v1622_v52  ;;  %v757_v30 = vmul.f32 %v1631_v36, %v701_v25 }
 0x16b   :  { %v715_v37 = vmax.f32 %v556_v21, 0.0  ;;  %v758_v50 = vmul.f32 %v1631_v36, %v702_v60 }
 0x16c   :  { %v716_v43 = vmax.f32 %v575_v32, 0.0  ;;  %v797_v11 = vadd.f32 %v757_v30, %v749_v16 }
 0x16d   :  { %v591_v10 = vpop.f32.mrf.mxu2  ;;  %v771_v57 = vmul.f32 %v1645_v9, %v715_v37 }
 0x16e   :  { %v610_v26 = vpop.f32.mrf.mxu3  ;;  %v592_v13 = vadd.f32 %v591_v10, %v1620_v23  ;;  %v772_v54 = vmul.f32 %v1645_v9, %v716_v43  ;;  %v750_v10 = vmul.f32 %v1625_v3, %v694_v34 }
 0x16f   :  { %v611_v19 = vadd.f32 %v610_v26, %v1620_v23  ;;  %v781_v35 = vadd.f32 %v780_v29, %v771_v57 }
 0x170   :  { %v709_v8 = vmax.f32 %v592_v13, 0.0  ;;  %v790_v41 = vadd.f32 %v789_v38, %v772_v54  ;;  %v806_v31 = vadd.f32 %v758_v50, %v750_v10 }
 0x171   :  { %v710_v0 = vmax.f32 %v611_v19, 0.0  ;;  %v782_v42 = vrot.slane %v781_v35, 4 }
 0x172   :  { %v765_v49 = vmul.f32 %v1637_v7, %v709_v8  ;;  %v791_v26 = vrot.slane %v790_v41, 4 }
 0x173   :  { %v766_v18 = vmul.f32 %v1637_v7, %v710_v0  ;;  %v783_v45 = vadd.f32 %v782_v42, %v781_v35  ;;  %v1670_v0 = vperm.slane %v855_v55, 0 }
 0x174   :  { %v798_v44 = vadd.f32 %v797_v11, %v765_v49 }
 0x175   :  { %v593_v27 = vpop.f32.mrf.mxu2  ;;  %v807_v62 = vadd.f32 %v806_v31, %v766_v18  ;;  %v784_v17 = vrot.slane %v783_v45, 2 }
 0x176   :  { %v594_v61 = vadd.f32 %v593_v27, %v1622_v52  ;;  %v612_v53 = vpop.f32.mrf.mxu3  ;;  %v792_v27 = vadd.f32 %v791_v26, %v790_v41 }
 0x177   :  { %v613_v20 = vadd.f32 %v612_v53, %v1622_v52  ;;  %v785_v60 = vadd.f32 %v784_v17, %v783_v45 }
 0x178   :  { %v717_v40 = vmax.f32 %v594_v61, 0.0  ;;  %v793_v43 = vrot.slane %v792_v27, 2 }
 0x179   :  { %v718_v6 = vmax.f32 %v613_v20, 0.0  ;;  %v786_v59 = vrot.slane %v785_v60, 1 }
 0x17a   :  { %v773_v12 = vmul.f32 %v1645_v9, %v717_v40  ;;  %v794_v2 = vadd.f32 %v793_v43, %v792_v27 }
 0x17b   :  { %v774_v4 = vmul.f32 %v1645_v9, %v718_v6  ;;  %v787_v31 = vadd.f32 %v786_v59, %v785_v60 }
 0x17c   :  { %v799_v33 = vadd.f32 %v798_v44, %v773_v12  ;;  %v795_v21 = vrot.slane %v794_v2, 1 }
 0x17d   :  { %v808_v39 = vadd.f32 %v807_v62, %v774_v4  ;;  %v858_v55 = vadd.f32 %v1670_v0, %v787_v31 }
 0x17e   :  { %v800_v5 = vrot.slane %v799_v33, 4  ;;  %v796_v30 = vadd.f32 %v795_v21, %v794_v2 }
 0x17f   :  { %v809_v13 = vrot.slane %v808_v39, 4 }
 0x180   :  { %v801_v28 = vadd.f32 %v800_v5, %v799_v33  ;;  %v859_v11 = vadd.f32 %v1670_v0, %v796_v30 }
 0x181   :  { %v810_v25 = vadd.f32 %v809_v13, %v808_v39 }
 0x182   :  { %v802_v61 = vrot.slane %v801_v28, 2 }
 0x183   :  { %v811_v19 = vrot.slane %v810_v25, 2 }
 0x184   :  { %v803_v54 = vadd.f32 %v802_v61, %v801_v28 }
 0x185   :  { %v812_v34 = vadd.f32 %v811_v19, %v810_v25 }
 0x186   :  { %v804_v16 = vrot.slane %v803_v54, 1 }
 0x187   :  { %v813_v10 = vrot.slane %v812_v34, 1 }
 0x188   :  { %v805_v26 = vadd.f32 %v804_v16, %v803_v54  ;;  %v1157_v16 = vmul.f32 -1.442695, %v858_v55 }
 0x189   :  { %v814_v39 = vadd.f32 %v813_v10, %v812_v34 }
 0x18a   :  { %v860_v13 = vadd.f32 %v1670_v0, %v805_v26 }
 0x190   :  { %v624_v32 = vpop.f32.mrf.mxu0 }
 0x191   :  { %v643_v1 = vpop.f32.mrf.mxu1  ;;  %v625_v20 = vadd.f32 %v624_v32, %v1616_v48 }
 0x192   :  { %v644_v40 = vadd.f32 %v643_v1, %v1616_v48  ;;  %v1158_v1 = vmul.f32 -1.442695, %v859_v11 }
 0x193   :  { %v695_v63 = vmax.f32 %v625_v20, 0.0 }
 0x194   :  { %v696_v12 = vmax.f32 %v644_v40, 0.0  ;;  %1183 = vpow2.f32 %v1158_v1 }
 0x195   :  { %v751_v4 = vmul.f32 %v1625_v3, %v695_v63 }
 0x196   :  { %v752_v35 = vmul.f32 %v1625_v3, %v696_v12 }
 0x198   :  { %v626_v24 = vpop.f32.mrf.mxu0 }
 0x199   :  { %v645_v58 = vpop.f32.mrf.mxu1  ;;  %v627_v14 = vadd.f32 %v626_v24, %v1618_v51 }
 0x19a   :  { %v646_v8 = vadd.f32 %v645_v58, %v1618_v51  ;;  %v1184_v26 = vpop.eup %1183 }
 0x19b   :  { %v703_v37 = vmax.f32 %v627_v14, 0.0 }
 0x19c   :  { %v704_v41 = vmax.f32 %v646_v8, 0.0  ;;  %v861_v8 = vadd.f32 %v1670_v0, %v814_v39 }
 0x19d   :  { %v662_v53 = vpop.f32.mrf.mxu2  ;;  %v759_v57 = vmul.f32 %v1631_v36, %v703_v37 }
 0x19e   :  { %v681_v46 = vpop.f32.mrf.mxu3  ;;  %v760_v44 = vmul.f32 %v1631_v36, %v704_v41  ;;  %v663_v2 = vadd.f32 %v662_v53, %v1616_v48  ;;  %v1159_v53 = vmul.f32 -1.442695, %v860_v13  ;;  %v1160_v34 = vmul.f32 -1.442695, %v861_v8 }
 0x19f   :  { %v815_v5 = vadd.f32 %v759_v57, %v751_v4  ;;  %v682_v19 = vadd.f32 %v681_v46, %v1616_v48 }
 0x1a0   :  { %v629_v47 = vpop.f32.mrf.mxu0  ;;  %v824_v24 = vadd.f32 %v760_v44, %v752_v35  ;;  %1185 = vpow2.f32 %v1159_v53 }
 0x1a1   :  { %v648_v15 = vpop.f32.mrf.mxu1  ;;  %v630_v38 = vadd.f32 %v629_v47, %v1620_v23  ;;  %1187 = vpow2.f32 %v1160_v34 }
 0x1a2   :  { %v649_v56 = vadd.f32 %v648_v15, %v1620_v23  ;;  %1189 = vpow2.f32 %v1157_v16 }
 0x1a3   :  { %v711_v50 = vmax.f32 %v630_v38, 0.0  ;;  %v697_v38 = vmax.f32 %v663_v2, 0.0 }
 0x1a4   :  { %v712_v22 = vmax.f32 %v649_v56, 0.0  ;;  %v698_v56 = vmax.f32 %v682_v19, 0.0 }
 0x1a5   :  { %v664_v49 = vpop.f32.mrf.mxu2  ;;  %v767_v32 = vmul.f32 %v1637_v7, %v711_v50  ;;  %v753_v63 = vmul.f32 %v1625_v3, %v697_v38 }
 0x1a6   :  { %v683_v6 = vpop.f32.mrf.mxu3  ;;  %v768_v62 = vmul.f32 %v1637_v7, %v712_v22  ;;  %v665_v42 = vadd.f32 %v664_v49, %v1618_v51  ;;  %v754_v22 = vmul.f32 %v1625_v3, %v698_v56  ;;  %v1701_v3 = vadd.f32 1.0, %v1184_v26 }
 0x1a7   :  { %v684_v28 = vadd.f32 %v683_v6, %v1618_v51  ;;  %v816_v25 = vadd.f32 %v815_v5, %v767_v32 }
 0x1a8   :  { %v631_v18 = vpop.f32.mrf.mxu0  ;;  %v825_v14 = vadd.f32 %v824_v24, %v768_v62  ;;  %v705_v51 = vmax.f32 %v665_v42, 0.0  ;;  %v1186_v62 = vpop.eup %1185  ;;  %1191 = vrcp.f32 %v1701_v3  ;;  %vm918_vm3 = vweird.f32 %v1701_v3 }
 0x1a9   :  { %v650_v29 = vpop.f32.mrf.mxu1  ;;  %v632_v33 = vadd.f32 %v631_v18, %v1622_v52  ;;  %v706_v60 = vmax.f32 %v684_v28, 0.0  ;;  %v1188_v13 = vpop.eup %1187 }
 0x1aa   :  { %v651_v27 = vadd.f32 %v650_v29, %v1622_v52  ;;  %v761_v37 = vmul.f32 %v1631_v36, %v705_v51 }
 0x1ab   :  { %v719_v43 = vmax.f32 %v632_v33, 0.0  ;;  %v762_v41 = vmul.f32 %v1631_v36, %v706_v60 }
 0x1ac   :  { %v720_v58 = vmax.f32 %v651_v27, 0.0  ;;  %v833_v36 = vadd.f32 %v761_v37, %v753_v63 }
 0x1ad   :  { %v667_v45 = vpop.f32.mrf.mxu2  ;;  %v775_v61 = vmul.f32 %v1645_v9, %v719_v43  ;;  %v842_v31 = vadd.f32 %v762_v41, %v754_v22 }
 0x1ae   :  { %v668_v17 = vadd.f32 %v667_v45, %v1620_v23  ;;  %v686_v21 = vpop.f32.mrf.mxu3  ;;  %v776_v47 = vmul.f32 %v1645_v9, %v720_v58  ;;  %v1190_v58 = vpop.eup %1189 }
 0x1af   :  { %v687_v54 = vadd.f32 %v686_v21, %v1620_v23  ;;  %v817_v15 = vadd.f32 %v816_v25, %v775_v61  ;;  %v1707_v25 = vadd.f32 1.0, %v1186_v62  ;;  %v1709_v21 = vadd.f32 1.0, %v1188_v13  ;;  %v1714_v51 = vpop.eup %1191 }
 0x1b0   :  { %v826_v20 = vadd.f32 %v825_v14, %v776_v47  ;;  %v713_v40 = vmax.f32 %v668_v17, 0.0  ;;  %v1711_v14 = vadd.f32 1.0, %v1190_v58  ;;  %vm919_vm2 = vweird.f32 %v1714_v51 }
 0x1b1   :  { %v818_v30 = vrot.slane %v817_v15, 4  ;;  %v714_v46 = vmax.f32 %v687_v54, 0.0  ;;  %vm1760_vm4 = vmor %vm918_vm3, %vm919_vm2  ;;  %vm933_vm8 = vweird.f32 %v1707_v25  ;;  %vm948_vm10 = vweird.f32 %v1709_v21 }
 0x1b2   :  { %v827_v48 = vrot.slane %v826_v20, 4  ;;  %v769_v6 = vmul.f32 %v1637_v7, %v713_v40  ;;  %vm903_vm0 = vweird.f32 %v1711_v14  ;;  %vm1035_vm3 = vcmask 1042434  }
 0x1b3   :  { %v819_v23 = vadd.f32 %v818_v30, %v817_v15  ;;  %v770_v57 = vmul.f32 %v1637_v7, %v714_v46 }
 0x1b4   :  { %v828_v49 = vadd.f32 %v827_v48, %v826_v20  ;;  %v834_v1 = vadd.f32 %v833_v36, %v769_v6  ;;  %v914_v20 = vmul.f32 %v1714_v51, %v1701_v3 }
 0x1b5   :  { %v669_v59 = vpop.f32.mrf.mxu2  ;;  %v820_v50 = vrot.slane %v819_v23, 2  ;;  %v843_v7 = vadd.f32 %v842_v31, %v770_v57 }
 0x1b6   :  { %v670_v11 = vadd.f32 %v669_v59, %v1622_v52  ;;  %v688_v12 = vpop.f32.mrf.mxu3  ;;  %v829_v10 = vrot.slane %v828_v49, 2  ;;  %v915_v16 = vsub.f32 1.0, %v914_v20 }
 0x1b7   :  { %v689_v18 = vadd.f32 %v688_v12, %v1622_v52  ;;  %v821_v44 = vadd.f32 %v820_v50, %v819_v23 }
 0x1b8   :  { %v721_v29 = vmax.f32 %v670_v11, 0.0  ;;  %v830_v4 = vadd.f32 %v829_v10, %v828_v49  ;;  %v916_v11 = vmul.f32 %v1714_v51, %v915_v16 }
 0x1b9   :  { %v722_v32 = vmax.f32 %v689_v18, 0.0  ;;  %v822_v33 = vrot.slane %v821_v44, 1 }
 0x1ba   :  { %v777_v35 = vmul.f32 %v1645_v9, %v721_v29  ;;  %v831_v27 = vrot.slane %v830_v4, 1  ;;  %v917_v26 = vadd.f32 %v1714_v51, %v916_v11  ;;  %v907_v29 = vand.u32 2147483647, %v1711_v14 }
 0x1bb   :  { %v778_v52 = vmul.f32 %v1645_v9, %v722_v32  ;;  %v823_v39 = vadd.f32 %v822_v33, %v821_v44 }
 0x1bc   :  { %v835_v5 = vadd.f32 %v834_v1, %v777_v35  ;;  %v832_v42 = vadd.f32 %v831_v27, %v830_v4  ;;  %v924_v4 = vand.u32 2147483648, %v1701_v3  ;;  %v909_v27 = vand.u32 2147483648, %v1711_v14 }
 0x1bd   :  { %v844_v43 = vadd.f32 %v843_v7, %v778_v52  ;;  %v862_v24 = vadd.f32 %v1670_v0, %v823_v39  ;;  %v922_v52 = vand.u32 2147483647, %v1701_v3  ;;  %v937_v39 = vand.u32 2147483647, %v1707_v25 }
 0x1be   :  { %v836_v28 = vrot.slane %v835_v5, 4  ;;  %v863_v45 = vadd.f32 %v1670_v0, %v832_v42  ;;  %v939_v42 = vand.u32 2147483648, %v1707_v25  ;;  %v925_v3 = vor.u32 1.1754944e-38, %v924_v4 }
 0x1bf   :  { %v845_v2 = vrot.slane %v844_v43, 4  ;;  %v1161_v61 = vmul.f32 -1.442695, %v862_v24  ;;  %v952_v24 = vand.u32 2147483647, %v1709_v21  ;;  %vm923_vm7 = vcmp.eq.f32.partialorder %v922_v52, 8.507059e+37 }
 0x1c0   :  { %v837_v17 = vadd.f32 %v836_v28, %v835_v5  ;;  %v1162_v9 = vmul.f32 -1.442695, %v863_v45  ;;  %v921_v5 = vsel %vm1760_vm4, %v1714_v51, %v917_v26  ;;  %vm1797_vm12 = vcmp.eq.f32.partialorder %v937_v39, 8.507059e+37 }
 0x1c1   :  { %v846_v19 = vadd.f32 %v845_v2, %v844_v43  ;;  %1193 = vpow2.f32 %v1161_v61  ;;  %v954_v2 = vand.u32 2147483648, %v1709_v21  ;;  %vm1807_vm14 = vcmp.eq.f32.partialorder %v952_v24, 8.507059e+37 }
 0x1c2   :  { %v838_v47 = vrot.slane %v837_v17, 2  ;;  %1195 = vpow2.f32 %v1162_v9  ;;  %v910_v24 = vor.u32 1.1754944e-38, %v909_v27 }
 0x1c3   :  { %v847_v54 = vrot.slane %v846_v19, 2  ;;  %1197 = vrcp.f32 %v1707_v25 }
 0x1c4   :  { %v839_v8 = vadd.f32 %v838_v47, %v837_v17  ;;  %1199 = vrcp.f32 %v1709_v21  ;;  %v1785_v17 = vsel %vm923_vm7, %v925_v3, %v921_v5  ;;  %vm1033_vm7 = vcmask 1040384  }
 0x1c5   :  { %v848_v15 = vadd.f32 %v847_v54, %v846_v19  ;;  %1201 = vrcp.f32 %v1711_v14  ;;  %v940_v54 = vor.u32 1.1754944e-38, %v939_v42  ;;  %v1026_v52 = vrot.slane %v1785_v17, 7 }
 0x1c6   :  { %v840_v55 = vrot.slane %v839_v8, 1 }
 0x1c7   :  { %v849_v53 = vrot.slane %v848_v15, 1  ;;  %v1194_v60 = vpop.eup %1193 }
 0x1c8   :  { %v841_v38 = vadd.f32 %v840_v55, %v839_v8  ;;  %v1196_v30 = vpop.eup %1195  ;;  %v1720_v40 = vadd.f32 1.0, %v1194_v60  ;;  %v955_v60 = vor.u32 1.1754944e-38, %v954_v2 }
 0x1c9   :  { %v850_v56 = vadd.f32 %v849_v53, %v848_v15  ;;  %v1722_v48 = vpop.eup %1197  ;;  %v1724_v46 = vadd.f32 1.0, %v1196_v30 }
 0x1ca   :  { %v864_v34 = vadd.f32 %v1670_v0, %v841_v38  ;;  %v1727_v37 = vpop.eup %1199  ;;  %1203 = vrcp.f32 %v1720_v40  ;;  %v929_v41 = vmul.f32 %v1722_v48, %v1707_v25  ;;  %vm934_vm5 = vweird.f32 %v1722_v48 }
 0x1cb   :  { %v1730_v23 = vpop.eup %1201  ;;  %1205 = vrcp.f32 %v1724_v46  ;;  %v865_v59 = vadd.f32 %v1670_v0, %v850_v56  ;;  %v944_v63 = vmul.f32 %v1727_v37, %v1709_v21  ;;  %vm949_vm6 = vweird.f32 %v1727_v37  ;;  %vm1787_vm9 = vmor %vm933_vm8, %vm934_vm5 }
 0x1cc   :  { %v1163_v49 = vmul.f32 -1.442695, %v864_v34  ;;  %v899_v50 = vmul.f32 %v1730_v23, %v1711_v14  ;;  %v930_v22 = vsub.f32 1.0, %v929_v41  ;;  %vm904_vm11 = vweird.f32 %v1730_v23  ;;  %vm1803_vm13 = vmor %vm948_vm10, %vm949_vm6 }
 0x1cd   :  { %v1164_v6 = vmul.f32 -1.442695, %v865_v59  ;;  %v945_v57 = vsub.f32 1.0, %v944_v63  ;;  %v967_v53 = vand.u32 2147483647, %v1720_v40  ;;  %vm963_vm1 = vweird.f32 %v1720_v40 }
 0x1ce   :  { %1207 = vpow2.f32 %v1163_v49  ;;  %v900_v18 = vsub.f32 1.0, %v899_v50  ;;  %v931_v31 = vmul.f32 %v1722_v48, %v930_v22  ;;  %v969_v20 = vand.u32 2147483648, %v1720_v40 }
 0x1cf   :  { %1209 = vpow2.f32 %v1164_v6  ;;  %v946_v32 = vmul.f32 %v1727_v37, %v945_v57  ;;  %v982_v56 = vand.u32 2147483647, %v1724_v46  ;;  %vm978_vm5 = vweird.f32 %v1724_v46 }
 0x1d0   :  { %v1741_v12 = vpop.eup %1203  ;;  %v901_v62 = vmul.f32 %v1730_v23, %v900_v18  ;;  %v932_v13 = vadd.f32 %v1722_v48, %v931_v31  ;;  %vm968_vm6 = vcmp.eq.f32.partialorder %v967_v53, 8.507059e+37  ;;  %v970_v50 = vor.u32 1.1754944e-38, %v969_v20 }
 0x1d1   :  { %v1743_v10 = vpop.eup %1205  ;;  %v959_v0 = vmul.f32 %v1741_v12, %v1720_v40  ;;  %v947_v58 = vadd.f32 %v1727_v37, %v946_v32  ;;  %vm964_vm15 = vweird.f32 %v1741_v12  ;;  %vm1850_vm10 = vcmp.eq.f32.partialorder %v907_v29, 8.507059e+37 }
 0x1d2   :  { %v974_v36 = vmul.f32 %v1743_v10, %v1724_v46  ;;  %v1783_v61 = vadd.f32 %v1730_v23, %v901_v62  ;;  %v936_v25 = vsel %vm1787_vm9, %v1722_v48, %v932_v13  ;;  %vm979_vm2 = vweird.f32 %v1743_v10  ;;  %vm1831_vm4 = vmor %vm963_vm1, %vm964_vm15 }
 0x1d3   :  { %v960_v33 = vsub.f32 1.0, %v959_v0  ;;  %v951_v15 = vsel %vm1803_vm13, %v1727_v37, %v947_v58  ;;  %v984_v48 = vand.u32 2147483648, %v1724_v46  ;;  %v941_v37 = vsel %vm1797_vm12, %v940_v54, %v936_v25  ;;  %vm1843_vm8 = vmor %vm978_vm5, %vm979_vm2 }
 0x1d4   :  { %v1208_v44 = vpop.eup %1207  ;;  %v975_v43 = vsub.f32 1.0, %v974_v36  ;;  %v956_v16 = vsel %vm1807_vm14, %v955_v60, %v951_v15  ;;  %vm983_vm12 = vcmp.eq.f32.partialorder %v982_v56, 8.507059e+37  ;;  %v1027_v4 = vrot.slane %v941_v37, 6  ;;  %vm1864_vm2 = vmor %vm903_vm0, %vm904_vm11 }
 0x1d5   :  { %v1756_v1 = vadd.f32 1.0, %v1208_v44  ;;  %v1210_v35 = vpop.eup %1209  ;;  %v961_v45 = vmul.f32 %v1741_v12, %v960_v33  ;;  %v985_v57 = vor.u32 1.1754944e-38, %v984_v48  ;;  %v906_v7 = vsel %vm1864_vm2, %v1730_v23, %v1783_v61 }
 0x1d6   :  { %v1774_v28 = vadd.f32 1.0, %v1210_v35  ;;  %v976_v19 = vmul.f32 %v1743_v10, %v975_v43  ;;  %vm1039_vm0 = vcmask 1044484   ;;  %v911_v23 = vsel %vm1850_vm10, %v910_v24, %v906_v7 }
 0x1d7   :  { %1211 = vrcp.f32 %v1756_v1  ;;  %v962_v55 = vadd.f32 %v1741_v12, %v961_v45  ;;  %v999_v59 = vand.u32 2147483648, %v1756_v1  ;;  %v997_v46 = vand.u32 2147483647, %v1756_v1 }
 0x1d8   :  { %1213 = vrcp.f32 %v1774_v28  ;;  %v977_v30 = vadd.f32 %v1743_v10, %v976_v19  ;;  %vm993_vm13 = vweird.f32 %v1756_v1  ;;  %v1014_v36 = vand.u32 2147483648, %v1774_v28 }
 0x1d9   :  { %v966_v49 = vsel %vm1831_vm4, %v1741_v12, %v962_v55  ;;  %v1000_v44 = vor.u32 1.1754944e-38, %v999_v59  ;;  %v1012_v29 = vand.u32 2147483647, %v1774_v28  ;;  %vm998_vm1 = vcmp.eq.f32.partialorder %v997_v46, 8.507059e+37 }
 0x1da   :  { %v981_v22 = vsel %vm1843_vm8, %v1743_v10, %v977_v30  ;;  %v971_v18 = vsel %vm968_vm6, %v970_v50, %v966_v49  ;;  %vm1008_vm4 = vweird.f32 %v1774_v28  ;;  %v1015_v5 = vor.u32 1.1754944e-38, %v1014_v36 }
 0x1db   :  { %v986_v32 = vsel %vm983_vm12, %v985_v57, %v981_v22  ;;  %v1029_v39 = vrot.slane %v971_v18, 4  ;;  %vm1013_vm11 = vcmp.eq.f32.partialorder %v1012_v29, 8.507059e+37  ;;  %vm1041_vm6 = vcmask 1046534  }
 0x1dc   :  { %v1030_v42 = vrot.slane %v986_v32, 3  ;;  %vm1037_vm8 = vcmask 1041408   ;;  %vm1045_vm12 = vcmask 1043456   ;;  %v1034_v45 = vsel %vm1033_vm7, %v911_v23, %v1026_v52 }
 0x1dd   :  { %v1212_v51 = vpop.eup %1211 }
 0x1de   :  { %v989_v38 = vmul.f32 %v1212_v51, %v1756_v1  ;;  %v1214_v34 = vpop.eup %1213  ;;  %vm994_vm9 = vweird.f32 %v1212_v51  ;;  %v1028_v1 = vrot.slane %v956_v16, 5  ;;  %v1040_v2 = vsel %vm1039_vm0, %v1029_v39, %v1030_v42 }
 0x1df   :  { %v1004_v63 = vmul.f32 %v1214_v34, %v1774_v28  ;;  %vm995_vm14 = vmor %vm993_vm13, %vm994_vm9  ;;  %vm1009_vm15 = vweird.f32 %v1214_v34  ;;  %vm1043_vm9 = vcmask 1045508  }
 0x1e0   :  { %v990_v41 = vsub.f32 1.0, %v989_v38  ;;  %vm1010_vm5 = vmor %vm1008_vm4, %vm1009_vm15  ;;  %v1036_v28 = vsel %vm1035_vm3, %v1027_v4, %v1028_v1 }
 0x1e1   :  { %v1005_v0 = vsub.f32 1.0, %v1004_v63  ;;  %v1038_v17 = vsel %vm1037_vm8, %v1034_v45, %v1036_v28 }
 0x1e2   :  { %v991_v11 = vmul.f32 %v1212_v51, %v990_v41 }
 0x1e3   :  { %v1006_v31 = vmul.f32 %v1214_v34, %v1005_v0 }
 0x1e4   :  { %v992_v26 = vadd.f32 %v1212_v51, %v991_v11 }
 0x1e5   :  { %v1007_v62 = vadd.f32 %v1214_v34, %v1006_v31 }
 0x1e6   :  { %v996_v33 = vsel %vm995_vm14, %v1212_v51, %v992_v26 }
 0x1e7   :  { %v1001_v35 = vsel %vm998_vm1, %v1000_v44, %v996_v33  ;;  %v1011_v13 = vsel %vm1010_vm5, %v1214_v34, %v1007_v62 }
 0x1e8   :  { %v1031_v43 = vrot.slane %v1001_v35, 2  ;;  %v1016_v3 = vsel %vm1013_vm11, %v1015_v5, %v1011_v13 }
 0x1e9   :  { %v1032_v58 = vrot.slane %v1016_v3, 1 }
 0x1eb   :  { %v1042_v61 = vsel %vm1041_vm6, %v1031_v43, %v1032_v58 }
 0x1ec   :  { %v1044_v9 = vsel %vm1043_vm9, %v1040_v2, %v1042_v61 }
 0x1ed   :  { %v1046_v14 = vsel %vm1045_vm12, %v1038_v17, %v1044_v9 }
 0x1ee   :  { %1048 = vst [vmem:[%s1890_s7] sm:$0xff] %v1046_v14 }

</bundles_post_ra>
